<compile_context>
chip_gen: v7x
topology: tpu7x:2x2x1
jax: 0.10.0
libtpu: 0.0.40
codegen_flags: <defaults>
</compile_context>

<pallas_src>
import functools

import numpy as np
import jax
import jax.numpy as jnp
from jax.experimental import pallas as pl
from jax.experimental.pallas import tpu as pltpu


# ----------------------------------------------------------------------------
# Pallas kernels
# ----------------------------------------------------------------------------

def _mm_kernel(*refs, relu, has_res):
    """K-tiled matmul, f32 accumulator; epilogue fuses bias (+residual) (+ReLU)."""
    if has_res:
        a_ref, b_ref, bias_ref, res_ref, o_ref, acc_ref = refs
    else:
        a_ref, b_ref, bias_ref, o_ref, acc_ref = refs
        res_ref = None

    k = pl.program_id(2)

    @pl.when(k == 0)
    def _init():
        acc_ref[...] = jnp.zeros_like(acc_ref)

    acc_ref[...] += jnp.dot(a_ref[...], b_ref[...],
                            preferred_element_type=jnp.float32)

    @pl.when(k == pl.num_programs(2) - 1)
    def _epilogue():
        acc = acc_ref[...] + bias_ref[...]
        if has_res:
            acc = acc + res_ref[...].astype(jnp.float32)
        if relu:
            acc = jnp.maximum(acc, 0.0)
        o_ref[...] = acc.astype(o_ref.dtype)


def _max_reduce_kernel(x_ref, o_ref):
    o_ref[...] = jnp.max(x_ref[...], axis=0)


def _pick_divisor(n, candidates):
    for c in candidates:
        if n % c == 0:
            return c
    return n


def matmul_bias(a, b, bias, relu, residual=None):
    """y = maybe_relu(a @ b + bias [+ residual]).

    a: (M, K), b: (K, N)  -> cast to bf16 for the MXU, accumulate in f32.
    bias: (N,) f32.  residual: optional (M, N), added in the epilogue.
    """
    M, K = a.shape
    K2, N = b.shape
    assert K == K2

    a = a.astype(jnp.bfloat16)
    b = b.astype(jnp.bfloat16)
    bias2d = bias.reshape(1, N).astype(jnp.float32)

    # N tile: 256 feeds the 256x256 MXU on v6e/v7x (128-wide also saturates v5e's 4x128x128).
    bn = _pick_divisor(N, (256, 128))
    # K tile: bounds per-step VMEM; every candidate is a multiple of 128 (lane aligned).
    tk = _pick_divisor(K, (1024, 768, 640, 576, 512, 384, 256, 128)) if K > 1024 else K
    # M tile: 256 rows, pipelined over the grid; pad M so the grid divides evenly.
    if M >= 256:
        tm = 256
        m_pad = -(-M // tm) * tm
    else:
        m_pad = -(-M // 8) * 8      # sublane aligned, single M block
        tm = m_pad
    if m_pad != M:
        a = jnp.pad(a, ((0, m_pad - M), (0, 0)))
        if residual is not None:
            residual = jnp.pad(residual, ((0, m_pad - M), (0, 0)))

    grid = (m_pad // tm, N // bn, K // tk)

    in_specs = [
        pl.BlockSpec((tm, tk), lambda i, j, k: (i, k)),   # LHS tile (pipelined DMA)
        pl.BlockSpec((tk, bn), lambda i, j, k: (k, j)),   # RHS tile
        pl.BlockSpec((1, bn), lambda i, j, k: (0, j)),    # bias (resident per j)
    ]
    operands = [a, b, bias2d]
    has_res = residual is not None
    if has_res:
        in_specs.append(pl.BlockSpec((tm, bn), lambda i, j, k: (i, j)))
        operands.append(residual.astype(jnp.float32))

    flops = 2 * m_pad * N * K
    bytes_accessed = (m_pad * K * 2 + K * N * 2 + m_pad * N * 4
                      + (m_pad * N * 4 if has_res else 0))

    y = pl.pallas_call(
        functools.partial(_mm_kernel, relu=relu, has_res=has_res),
        out_shape=jax.ShapeDtypeStruct((m_pad, N), jnp.float32),
        grid=grid,
        in_specs=in_specs,
        out_specs=pl.BlockSpec((tm, bn), lambda i, j, k: (i, j)),
        scratch_shapes=[pltpu.VMEM((tm, bn), jnp.float32)],
        compiler_params=pltpu.CompilerParams(
            dimension_semantics=("parallel", "parallel", "arbitrary")),
        cost_estimate=pl.CostEstimate(flops=flops, transcendentals=0,
                                      bytes_accessed=bytes_accessed),
    )(*operands)
    if m_pad != M:
        y = y[:M]
    return y


# ----------------------------------------------------------------------------
# Layer wrappers (im2col / pooling glue in plain JAX, hot path in Pallas)
# ----------------------------------------------------------------------------

@functools.partial(jax.jit, static_argnames=("kh", "kw", "stride", "pad", "relu"))
def conv_bn(x, w, bias, kh, kw, stride, pad, relu, residual=None):
    """Conv2d + folded BatchNorm (+fused residual add) (+ReLU).  x: NHWC f32, w: bf16."""
    B, H, W, C = x.shape
    if kh == 1 and kw == 1 and pad == 0:
        xs = x[:, ::stride, ::stride, :]
        _, OH, OW, _ = xs.shape
        patches = xs.reshape(B * OH * OW, C)
    else:
        OH = (H + 2 * pad - kh) // stride + 1
        OW = (W + 2 * pad - kw) // stride + 1
        xp = jnp.pad(x, ((0, 0), (pad, pad), (pad, pad), (0, 0)))
        cols = []
        for di in range(kh):
            for dj in range(kw):
                cols.append(xp[:, di:di + stride * (OH - 1) + 1:stride,
                               dj:dj + stride * (OW - 1) + 1:stride, :])
        # (B, OH, OW, kh*kw, C) -> (B*OH*OW, kh*kw*C): tap-major, channel-minor.
        # TODO(synk): a tap grid axis reading the padded NHWC activation directly would
        # avoid materializing the 9x-expanded im2col patches in HBM (bf16 mitigates it).
        patches = jnp.stack(cols, axis=3).reshape(B * OH * OW, kh * kw * C)
    patches = patches.astype(jnp.bfloat16)
    cout = w.shape[1]
    res2d = None if residual is None else residual.reshape(B * OH * OW, cout)
    y = matmul_bias(patches, w, bias, relu=relu, residual=res2d)
    return y.reshape(B, OH, OW, cout)


@functools.partial(jax.jit, static_argnames=("ksize", "stride", "pad"))
def maxpool_nhwc(x, ksize, stride, pad):
    """MaxPool2d(ksize, stride, pad), row-tiled.

    NOTE: zero padding is equivalent to -inf padding ONLY because the input is
    post-ReLU (>= 0).  Do not reuse for signed inputs.
    """
    B, H, W, C = x.shape
    OH = (H + 2 * pad - ksize) // stride + 1
    OW = (W + 2 * pad - ksize) // stride + 1
    xp = jnp.pad(x, ((0, 0), (pad, pad), (pad, pad), (0, 0)))
    cols = []
    for di in range(ksize):
        for dj in range(ksize):
            cols.append(xp[:, di:di + stride * (OH - 1) + 1:stride,
                           dj:dj + stride * (OW - 1) + 1:stride, :])
    M = B * OH * OW
    stacked = jnp.stack(cols, axis=0).reshape(ksize * ksize, M, C)
    tr = _pick_divisor(M, (512, 256, 128, 64, 32, 16, 8))
    y = pl.pallas_call(
        _max_reduce_kernel,
        out_shape=jax.ShapeDtypeStruct((M, C), x.dtype),
        grid=(M // tr,),
        in_specs=[pl.BlockSpec((ksize * ksize, tr, C), lambda i: (0, i, 0))],
        out_specs=pl.BlockSpec((tr, C), lambda i: (i, 0)),
        compiler_params=pltpu.CompilerParams(dimension_semantics=("parallel",)),
    )(stacked)
    return y.reshape(B, OH, OW, C)


def _adaptive_pool_matrix(in_size, out_size):
    """PyTorch AdaptiveAvgPool bin-averaging matrix (out_size, in_size)."""
    A = np.zeros((out_size, in_size), dtype=np.float32)
    for i in range(out_size):
        start = (i * in_size) // out_size
        end = -(-((i + 1) * in_size) // out_size)  # ceil
        A[i, start:end] = 1.0 / (end - start)
    return A


@functools.partial(jax.jit, static_argnames=("out_h", "out_w"))
def adaptive_avg_pool_nhwc(x, out_h, out_w):
    """AdaptiveAvgPool2d((out_h, out_w)) as a Pallas matmul: W2 @ x_flat."""
    B, H, W, C = x.shape
    A_h = _adaptive_pool_matrix(H, out_h)
    A_w = _adaptive_pool_matrix(W, out_w)
    W2 = jnp.asarray(np.kron(A_h, A_w), jnp.float32)            # (out_h*out_w, H*W)
    x2 = x.transpose(1, 2, 0, 3).reshape(H * W, B * C)          # (H*W, B*C)
    zeros = jnp.zeros((B * C,), jnp.float32)
    y = matmul_bias(W2, x2, zeros, relu=False)                  # (out_h*out_w, B*C)
    return y.reshape(out_h, out_w, B, C).transpose(2, 0, 1, 3)  # (B, out_h, out_w, C)


# ----------------------------------------------------------------------------
# ResNet-101 (synthetic deterministic weights, BN scale folded into weights)
# ----------------------------------------------------------------------------

def _make_conv_params(key, kh, kw, cin, cout):
    kw_, ks, kb = jax.random.split(key, 3)
    fan_in = kh * kw * cin
    w = jax.random.normal(kw_, (kh * kw * cin, cout), jnp.float32) * jnp.sqrt(1.0 / fan_in)
    scale = 1.0 + 0.05 * jax.random.normal(ks, (cout,), jnp.float32)  # folded BN gamma/sqrt(var)
    bias = 0.05 * jax.random.normal(kb, (cout,), jnp.float32)          # folded BN beta - mean*scale
    # Fold BN scale into the weight matrix; store weights in bf16 (MXU input dtype).
    return {"w": (w * scale[None, :]).astype(jnp.bfloat16), "bias": bias}


def build_params(key):
    counter = [0]

    def nk():
        counter[0] += 1
        return jax.random.fold_in(key, counter[0])

    params = {"stem": _make_conv_params(nk(), 7, 7, 3, 64)}
    layers_cfg = [(64, 3, 1), (128, 4, 2), (256, 23, 2), (512, 3, 2)]  # ResNet-101
    in_ch = 64
    layers = []
    for width, nblocks, stride in layers_cfg:
        out_ch = width * 4
        blocks = []
        for b in range(nblocks):
            s = stride if b == 0 else 1
            blk = {
                "c1": _make_conv_params(nk(), 1, 1, in_ch, width),
                "c2": _make_conv_params(nk(), 3, 3, width, width),
                "c3": _make_conv_params(nk(), 1, 1, width, out_ch),
            }
            if s != 1 or in_ch != out_ch:
                blk["ds"] = _make_conv_params(nk(), 1, 1, in_ch, out_ch)
            blocks.append((blk, s))
            in_ch = out_ch
        layers.append(blocks)
    params["layers"] = layers
    return params


def bottleneck(x, blk, stride):
    p1, p2, p3 = blk["c1"], blk["c2"], blk["c3"]
    out = conv_bn(x, p1["w"], p1["bias"], 1, 1, 1, 0, True)
    out = conv_bn(out, p2["w"], p2["bias"], 3, 3, stride, 1, True)
    if "ds" in blk:
        d = blk["ds"]
        identity = conv_bn(x, d["w"], d["bias"], 1, 1, stride, 0, False)
    else:
        identity = x
    # c3 1x1 conv with the residual add + ReLU fused into the matmul epilogue
    # (no separate HBM round trip for `out += identity; relu(out)`).
    return conv_bn(out, p3["w"], p3["bias"], 1, 1, 1, 0, True, residual=identity)


def encoder_forward(images_nchw, params, enc_image_size=14):
    """images: (B, 3, H, W) NCHW -> (B, enc, enc, 2048), matching Encoder.forward."""
    x = jnp.transpose(images_nchw, (0, 2, 3, 1)).astype(jnp.float32)  # NHWC
    p = params["stem"]
    x = conv_bn(x, p["w"], p["bias"], 7, 7, 2, 3, True)               # conv1 + bn1 + relu
    x = maxpool_nhwc(x, 3, 2, 1)                                      # maxpool
    for blocks in params["layers"]:                                   # layer1..layer4
        for blk, s in blocks:
            x = bottleneck(x, blk, s)
    x = adaptive_avg_pool_nhwc(x, enc_image_size, enc_image_size)     # AdaptiveAvgPool2d
    # NHWC result already equals PyTorch's out.permute(0, 2, 3, 1).
    return x


# ----------------------------------------------------------------------------
# Main
# ----------------------------------------------------------------------------

if __name__ == "__main__":
    key = jax.random.PRNGKey(0)
    params = build_params(jax.random.fold_in(key, 123))
    # Small image size consistent with the module (3-channel square images).
    images = jax.random.normal(jax.random.fold_in(key, 7), (2, 3, 64, 64), jnp.float32)

    out = encoder_forward(images, params, enc_image_size=14)
    out = jax.block_until_ready(out)

    assert out.shape == (2, 14, 14, 2048), out.shape
    assert bool(jnp.all(jnp.isfinite(out)))
    print("KERNEL_OK")
</pallas_src>

<mosaic_0001>
module attributes {stable_mosaic.version = 11 : i64} {
  func.func @_mm_kernel(%arg0: i32, %arg1: i32, %arg2: i32, %arg3: memref<256x147xbf16, #tpu.memory_space<vmem>>, %arg4: memref<147x64xbf16, #tpu.memory_space<vmem>>, %arg5: memref<1x64xf32, #tpu.memory_space<vmem>>, %arg6: memref<256x64xf32, #tpu.memory_space<vmem>>, %arg7: memref<256x64xf32, #tpu.memory_space<vmem>>) attributes {dimension_semantics = [#tpu.dimension_semantics<parallel>, #tpu.dimension_semantics<parallel>, #tpu.dimension_semantics<arbitrary>], iteration_bounds = array<i64: 8, 1, 1>, scalar_prefetch = 0 : i64, scratch_operands = 1 : i64, tpu.core_type = #tpu.core_type<tc>, window_params = [{transform_indices = @transform_0, window_bounds = array<i64: 256, 147>}, {transform_indices = @transform_1, window_bounds = array<i64: 147, 64>}, {transform_indices = @transform_2, window_bounds = array<i64: 1, 64>}, {transform_indices = @transform_3, window_bounds = array<i64: 256, 64>}]} {
    %c0_i32 = arith.constant 0 : i32
    %0 = arith.cmpi eq, %arg2, %c0_i32 : i32
    %1 = arith.extui %0 : i1 to i32
    %c0_i32_0 = arith.constant 0 : i32
    %2 = arith.cmpi ne, %1, %c0_i32_0 : i32
    scf.if %2 {
      %cst_10 = arith.constant 0.000000e+00 : f32
      %12 = vector.broadcast %cst_10 : f32 to vector<256x64xf32>
      %c0_11 = arith.constant 0 : index
      %c0_12 = arith.constant 0 : index
      %13 = vector.load %arg7[%c0_11, %c0_12] : memref<256x64xf32, #tpu.memory_space<vmem>>, vector<256x64xf32>
      tpu.vector_store %arg7[%c0_11, %c0_12], %12 {strides = array<i32>} : memref<256x64xf32, #tpu.memory_space<vmem>>, vector<256x64xf32>,
    } else {
    }
    %c0 = arith.constant 0 : index
    %c0_1 = arith.constant 0 : index
    %3 = vector.load %arg7[%c0, %c0_1] : memref<256x64xf32, #tpu.memory_space<vmem>>, vector<256x64xf32>
    %c0_2 = arith.constant 0 : index
    %c0_3 = arith.constant 0 : index
    %4 = vector.load %arg3[%c0_2, %c0_3] : memref<256x147xbf16, #tpu.memory_space<vmem>>, vector<256x147xbf16>
    %c0_4 = arith.constant 0 : index
    %c0_5 = arith.constant 0 : index
    %5 = vector.load %arg4[%c0_4, %c0_5] : memref<147x64xbf16, #tpu.memory_space<vmem>>, vector<147x64xbf16>
    %cst = arith.constant dense<0.000000e+00> : vector<256x64xf32>
    %6 = tpu.matmul %4, %5, %cst {dimension_numbers = #tpu.dot_dimension_numbers<[1], [0], [0], [1], [0, 0, 1, 1], [], []>} : vector<256x147xbf16>, vector<147x64xbf16>, vector<256x64xf32> -> vector<256x64xf32>
    %7 = arith.addf %3, %6 : vector<256x64xf32>
    %c0_6 = arith.constant 0 : index
    %c0_7 = arith.constant 0 : index
    %8 = vector.load %arg7[%c0_6, %c0_7] : memref<256x64xf32, #tpu.memory_space<vmem>>, vector<256x64xf32>
    tpu.vector_store %arg7[%c0_6, %c0_7], %7 {strides = array<i32>} : memref<256x64xf32, #tpu.memory_space<vmem>>, vector<256x64xf32>,
    %c0_i32_8 = arith.constant 0 : i32
    %9 = arith.cmpi eq, %arg2, %c0_i32_8 : i32
    %10 = arith.extui %9 : i1 to i32
    %c0_i32_9 = arith.constant 0 : i32
    %11 = arith.cmpi ne, %10, %c0_i32_9 : i32
    scf.if %11 {
      %c0_10 = arith.constant 0 : index
      %c0_11 = arith.constant 0 : index
      %12 = vector.load %arg7[%c0_10, %c0_11] : memref<256x64xf32, #tpu.memory_space<vmem>>, vector<256x64xf32>
      %c0_12 = arith.constant 0 : index
      %c0_13 = arith.constant 0 : index
      %13 = vector.load %arg5[%c0_12, %c0_13] : memref<1x64xf32, #tpu.memory_space<vmem>>, vector<1x64xf32>
      %14 = vector.broadcast %13 : vector<1x64xf32> to vector<256x64xf32>
      %15 = arith.addf %12, %14 : vector<256x64xf32>
      %cst_14 = arith.constant 0.000000e+00 : f32
      %16 = vector.broadcast %cst_14 : f32 to vector<256x64xf32>
      %17 = arith.maximumf %15, %16 : vector<256x64xf32>
      %c0_15 = arith.constant 0 : index
      %c0_16 = arith.constant 0 : index
      %18 = vector.load %arg6[%c0_15, %c0_16] : memref<256x64xf32, #tpu.memory_space<vmem>>, vector<256x64xf32>
      tpu.vector_store %arg6[%c0_15, %c0_16], %17 {strides = array<i32>} : memref<256x64xf32, #tpu.memory_space<vmem>>, vector<256x64xf32>,
    } else {
    }
    return
  }
  func.func @transform_0(%arg0: i32, %arg1: i32, %arg2: i32) -> (i32, i32) {
    %c0_i32 = arith.constant 0 : i32
    return %arg0, %arg2 : i32, i32
  }
  func.func @transform_1(%arg0: i32, %arg1: i32, %arg2: i32) -> (i32, i32) {
    %c0_i32 = arith.constant 0 : i32
    return %arg2, %arg1 : i32, i32
  }
  func.func @transform_2(%arg0: i32, %arg1: i32, %arg2: i32) -> (i32, i32) {
    %c0_i32 = arith.constant 0 : i32
    %c0_i32_0 = arith.constant 0 : i32
    return %c0_i32, %arg1 : i32, i32
  }
  func.func @transform_3(%arg0: i32, %arg1: i32, %arg2: i32) -> (i32, i32) {
    %c0_i32 = arith.constant 0 : i32
    return %arg0, %arg1 : i32, i32
  }
}

</mosaic_0001>

<bundles_post_ra>
// kernel: conv_bn.1
= control target key start
LH: loop header
LB: loop body
LE: loop exit
PB: predicated region body
PF: predicated region fallthrough
CT: control target
= control target key end

     0   :  { %8 = vsyncpa [#allocation4], 0  ;;  %s1839_s0 = inlined_call_operand.vmem [shape: bf16[2048,147], index: 0, kind: input, shape index: {}]   ;;  %s1840_s1 = inlined_call_operand.vmem [shape: bf16[147,64], index: 1, kind: input, shape index: {}]   ;;  %s1841_s2 = inlined_call_operand.vmem [shape: f32[1,64], index: 2, kind: input, shape index: {}]   ;;  %s1842_s3 = inlined_call_operand.hbm [shape: f32[2048,64], index: 3, kind: output, shape index: {}]  }
   0x1   :  { %10 = vsyncpa [#allocation4 + $0x1], 0  ;;  %s1448_s12 = smov 0   ;;  %s1450_s13 = smov 0  }
   0x2   :  { %s1452_s14 = smov 0   ;;  %s1454_s15 = smov 0  }
   0x3   :  { %s1456_s16 = smov 0   ;;  %s1458_s17 = smov 0  }
   0x4 LB: > { %s1127_s18 = sadd.s32 4294967295, %s1420_s17   ;;  %s1128_s19 = sadd.s32 4294967294, %s1420_s17   ;;  %s1420_s17 = sphi %s1458_s17, %s16_s17   ;;  %s1416_s16 = sphi %s1456_s16, %s1849_s16   ;;  %s1412_s15 = sphi %s1454_s15, %s1848_s15   ;;  %s1408_s14 = sphi %s1452_s14, %s1847_s14   ;;  %s1404_s13 = sphi %s1450_s13, %s1846_s13   ;;  %s1400_s12 = sphi %s1448_s12, %s1845_s12  }
   0x5   : > { %s35_s20 = sadd.s32 1, %s1416_s16  ;;  %s126_s21 = sadd.s32 1, %s1408_s14 }
   0x6   : > { %p37_p0 = scmp.ge.s32.totalorder %s35_s20, 8  ;;  %p136_p1 = scmp.ne.s32.totalorder %s1408_s14, %s1404_s13 }
   0x7   : > { %p137_p2 = scmp.eq.s32.totalorder %s1127_s18, 7  ;;  %p142_p3 = scmp.ne.s32.totalorder %s1404_s13, %s1400_s12 }
   0x8   : > { %s1851_s20 = smov (%p37_p0, %s35_s20), 0  ;;  %p143_p5 = scmp.eq.s32.totalorder %s1128_s19, 7 }
   0x9   : > { %p1488_p4 = por %p137_p2, %p136_p1  ;;  %s121_s23 = ssub.s32 %s1416_s16, %s1851_s20 }
   0xa   : > { %p1133_p6 = scmp.ge.s32.totalorder %s1420_s17, 1  ;;  %p124_p7 = scmp.eq.s32.totalorder %s121_s23, 0 }
   0xb   : > { %p1495_p8 = por %p143_p5, %p142_p3  ;;  %p194_p9 = scmp.lt.s32.totalorder %s1420_s17, 9 }
   0xc   : > { %s1501_s25 = scalar_select %p124_p7, %s1408_s14, %s126_s21  }
   0xd   : > { %p195_p10 = pnand %p1133_p6, %p194_p9 }
   0xe   : > { %v1284_v0 = vld [vmem:[%s1840_s1] sm:$0xff] (!%p195_p10)   ;;  %v1422_v1 = vmov (!%p195_p10), 0   ;;  %v1285_v2 = vld [vmem:[%s1840_s1 + $0x8] sm:$0xff] (!%p195_p10)   ;;  %v1286_v3 = vld [vmem:[%s1840_s1 + $0x10] sm:$0xff] (!%p195_p10)   ;;  %s1135_s5 = sshll.u32 (!%p195_p10), %s1412_s15, 5  ;;  %vm264_vm0 = vcmask (!%p195_p10), 523264  }
   0xf   : > { %198 = sbr.rel (%p195_p10) target bundleno = 355 (0x163), region = 32  ;;  %637 = vmatprep.subr.bf16.mxu0 (!%p195_p10), %v1422_v1  ;;  %1204 = vmatprep.subr.bf16.mxu1 (!%p195_p10), %v1422_v1  ;;  %p236_p11 = scmp.lt.s32.totalorder (!%p195_p10), %s1135_s5, 255  ;;  %v1287_v4 = vld [vmem:[%s1840_s1 + $0x18] sm:$0xff] (!%p195_p10)   ;;  %v1423_v5 = vmov (!%p195_p10), 0.0   ;;  %v1288_v6 = vld [vmem:[%s1840_s1 + $0x20] sm:$0xff] (!%p195_p10)   ;;  %vm581_vm1 = vcmask (!%p195_p10), 154624  }
  0x10   : > { %638 = vmatpush1.bf16.msra.mxu0 (!%p195_p10), %v1284_v0  ;;  %1214 = vmatpush1.bf16.msra.mxu1 (!%p195_p10), %v1284_v0  ;;  %265 = vst.msk [vmem:[#allocation2] sm:$0xff] (!%p195_p10), %vm264_vm0, %v1423_v5  ;;  %266 = vst.msk [vmem:[#allocation2 + $0x8] sm:$0xff] (!%p195_p10), %vm264_vm0, %v1423_v5  ;;  %v1289_v9 = vld [vmem:[%s1840_s1 + $0x28] sm:$0xff] (!%p195_p10)   ;;  %v1290_v10 = vld [vmem:[%s1840_s1 + $0x30] sm:$0xff] (!%p195_p10)   ;;  %vm630_vm2 = vcmask (!%p195_p10), 1040384   ;;  %vm631_vm3 = vcmask (!%p195_p10), 1041408  }
  0x11   : > { %639 = vmatprep.subr.bf16.mxu0 (!%p195_p10), %v1422_v1  ;;  %1205 = vmatprep.subr.bf16.mxu1 (!%p195_p10), %v1422_v1  ;;  %267 = vst.msk [vmem:[#allocation2 + $0x10] sm:$0xff] (!%p195_p10), %vm264_vm0, %v1423_v5  ;;  %268 = vst.msk [vmem:[#allocation2 + $0x18] sm:$0xff] (!%p195_p10), %vm264_vm0, %v1423_v5  ;;  %v1291_v11 = vld [vmem:[%s1840_s1 + $0x38] sm:$0xff] (!%p195_p10)   ;;  %v1424_v12 = vmov (!%p195_p10), 65535   ;;  %v1292_v14 = vld [vmem:[%s1840_s1 + $0x40] sm:$0xff] (!%p195_p10)   ;;  %s231_s7 = sand.u32 (!%p195_p10), 1, %s1404_s13  }
  0x12   : > { %269 = vst.msk [vmem:[#allocation2 + $0x20] sm:$0xff] (!%p195_p10), %vm264_vm0, %v1423_v5  ;;  %270 = vst.msk [vmem:[#allocation2 + $0x28] sm:$0xff] (!%p195_p10), %vm264_vm0, %v1423_v5  ;;  %v632_v13 = vsel (!%p195_p10), %vm630_vm2, 4294967295, %v1424_v12  ;;  %v1293_v15 = vld [vmem:[%s1840_s1 + $0x48] ss:$0 sps:$4 sm:$0x33] (!%p195_p10)  }
  0x13   : > { %271 = vst.msk [vmem:[#allocation2 + $0x30] sm:$0xff] (!%p195_p10), %vm264_vm0, %v1423_v5  ;;  %272 = vst.msk [vmem:[#allocation2 + $0x38] sm:$0xff] (!%p195_p10), %vm264_vm0, %v1423_v5  ;;  %v633_v16 = vsel (!%p195_p10), %vm631_vm3, %v632_v13, 0  ;;  %s1134_s10 = sshll.u32 (!%p195_p10), %s231_s7, 8  ;;  %s1203_s18 = sshll.u32 (!%p195_p10), %s1412_s15, 12 }
  0x14   : > { %640 = vmatpush1.bf16.msra.mxu0 (!%p195_p10), %v1285_v2  ;;  %1215 = vmatpush1.bf16.msra.mxu1 (!%p195_p10), %v1285_v2  ;;  %273 = vst.msk [vmem:[#allocation2 + $0x40] sm:$0xff] (!%p195_p10), %vm264_vm0, %v1423_v5  ;;  %274 = vst.msk [vmem:[#allocation2 + $0x48] sm:$0xff] (!%p195_p10), %vm264_vm0, %v1423_v5  ;;  %v635_v17 = vand.u32 (!%p195_p10), %v1293_v15, %v633_v16  ;;  %v1652_v2 = vld [vmem:[%s1841_s2] ss:$0 sm:$0xff] (!%p195_p10)  ;;  %s1779_s26 = scalar_lea.hbm (!%p195_p10), %s1842_s3, %s1203_s18  ;;  %s1793_s15 = scalar_lea.sflag (!%p195_p10), [#allocation4], %s231_s7 }
  0x15   : > { %641 = vmatprep.subr.bf16.mxu0 (!%p195_p10), %v1422_v1  ;;  %1206 = vmatprep.subr.bf16.mxu1 (!%p195_p10), %v1422_v1  ;;  %275 = vst.msk [vmem:[#allocation2 + $0x50] sm:$0xff] (!%p195_p10), %vm264_vm0, %v1423_v5  ;;  %276 = vst.msk [vmem:[#allocation2 + $0x58] sm:$0xff] (!%p195_p10), %vm264_vm0, %v1423_v5  ;;  %s1425_s28 = smov (!%p195_p10), [#allocation3]  }
  0x16   : > { %s1853_s5 = smov (!%p236_p11, %s1135_s5), 255  ;;  %277 = vst.msk [vmem:[#allocation2 + $0x60] sm:$0xff] %vm264_vm0, %v1423_v5  ;;  %278 = vst.msk [vmem:[#allocation2 + $0x68] sm:$0xff] %vm264_vm0, %v1423_v5  ;;  %s1346_s29 = sshll.u32 %s1425_s28, 4  ;;  %s1347_s29 = int_to_ptr.vmem [resolvable:$false] %s1346_s29 }
  0x17   : > { %s1202_s8 = sshll.u32 %s1853_s5, 3  ;;  %279 = vst.msk [vmem:[#allocation2 + $0x70] sm:$0xff] %vm264_vm0, %v1423_v5  ;;  %280 = vst.msk [vmem:[#allocation2 + $0x78] sm:$0xff] %vm264_vm0, %v1423_v5  ;;  %v297_v48 = vld [vmem:[#allocation2] sm:$0xff]  ;;  %v298_v52 = vld [vmem:[#allocation2 + $0x8] sm:$0xff]  ;;  %s1348_s30 = scalar_lea.vmem %s1347_s29, 8192 }
  0x18   : > { %642 = vmatpush1.bf16.msra.mxu0 %v1286_v3  ;;  %1216 = vmatpush1.bf16.msra.mxu1 %v1286_v3  ;;  %281 = vst.msk [vmem:[#allocation2 + $0x80] sm:$0xff] %vm264_vm0, %v1423_v5  ;;  %282 = vst.msk [vmem:[#allocation2 + $0x88] sm:$0xff] %vm264_vm0, %v1423_v5  ;;  %s1564_s11 = scalar_lea.vmem %s1839_s0, %s1202_s8  ;;  %v299_v0 = vld [vmem:[#allocation2 + $0x10] sm:$0xff] }
  0x19   : > { %643 = vmatprep.subr.bf16.mxu0 %v1422_v1  ;;  %1207 = vmatprep.subr.bf16.mxu1 %v1422_v1  ;;  %283 = vst.msk [vmem:[#allocation2 + $0x90] sm:$0xff] %vm264_vm0, %v1423_v5  ;;  %284 = vst.msk [vmem:[#allocation2 + $0x98] sm:$0xff] %vm264_vm0, %v1423_v5  ;;  %v1296_v7 = vld [vmem:[%s1564_s11 + $0x4] ss:$8 sps:$4 sm:$0xff]   ;;  %v1294_v18 = vld [vmem:[%s1564_s11] ss:$8 sps:$4 sm:$0xff]  }
  0x1a   : > { %285 = vst.msk [vmem:[#allocation2 + $0xa0] sm:$0xff] %vm264_vm0, %v1423_v5  ;;  %286 = vst.msk [vmem:[#allocation2 + $0xa8] sm:$0xff] %vm264_vm0, %v1423_v5  ;;  %v1299_v8 = vld [vmem:[%s1564_s11 + $0x84] ss:$8 sps:$4 sm:$0xff]   ;;  %1180 = vmatprep.mubr.msk.bf16.mxu0 %vm581_vm1, %v1296_v7  ;;  %v1297_v19 = vld [vmem:[%s1564_s11 + $0x80] ss:$8 sps:$4 sm:$0xff]  }
  0x1b   : > { %287 = vst.msk [vmem:[#allocation2 + $0xb0] sm:$0xff] %vm264_vm0, %v1423_v5  ;;  %288 = vst.msk [vmem:[#allocation2 + $0xb8] sm:$0xff] %vm264_vm0, %v1423_v5  ;;  %1188 = vmatprep.mubr.msk.bf16.mxu1 %vm581_vm1, %v1299_v8  ;;  %v1300_v20 = vld [vmem:[%s1564_s11 + $0x14] ss:$8 sps:$4 sm:$0xff]   ;;  %v1304_v22 = vld [vmem:[%s1564_s11 + $0x10] ss:$8 sps:$4 sm:$0xff]  }
  0x1c   : > { %289 = vst.msk [vmem:[#allocation2 + $0xc0] sm:$0xff] %vm264_vm0, %v1423_v5  ;;  %290 = vst.msk [vmem:[#allocation2 + $0xc8] sm:$0xff] %vm264_vm0, %v1423_v5  ;;  %644 = vmatpush1.bf16.msra.mxu0 %v1287_v4  ;;  %1217 = vmatpush1.bf16.msra.mxu1 %v1287_v4  ;;  %v1302_v21 = vld [vmem:[%s1564_s11 + $0x94] ss:$8 sps:$4 sm:$0xff]   ;;  %v1305_v23 = vld [vmem:[%s1564_s11 + $0x90] ss:$8 sps:$4 sm:$0xff]  }
  0x1d   : > { %291 = vst.msk [vmem:[#allocation2 + $0xd0] sm:$0xff] %vm264_vm0, %v1423_v5  ;;  %292 = vst.msk [vmem:[#allocation2 + $0xd8] sm:$0xff] %vm264_vm0, %v1423_v5  ;;  %645 = vmatprep.subr.bf16.mxu0 %v1422_v1  ;;  %1208 = vmatprep.subr.bf16.mxu1 %v1422_v1  ;;  %v1306_v24 = vld [vmem:[%s1564_s11 + $0x24] ss:$8 sps:$4 sm:$0xff]   ;;  %v1310_v26 = vld [vmem:[%s1564_s11 + $0x20] ss:$8 sps:$4 sm:$0xff]  }
  0x1e   : > { %293 = vst.msk [vmem:[#allocation2 + $0xe0] sm:$0xff] %vm264_vm0, %v1423_v5  ;;  %294 = vst.msk [vmem:[#allocation2 + $0xe8] sm:$0xff] %vm264_vm0, %v1423_v5  ;;  %v1308_v25 = vld [vmem:[%s1564_s11 + $0xa4] ss:$8 sps:$4 sm:$0xff]   ;;  %v1311_v27 = vld [vmem:[%s1564_s11 + $0xa0] ss:$8 sps:$4 sm:$0xff]  }
  0x1f   : > { %295 = vst.msk [vmem:[#allocation2 + $0xf0] sm:$0xff] %vm264_vm0, %v1423_v5  ;;  %296 = vst.msk [vmem:[#allocation2 + $0xf8] sm:$0xff] %vm264_vm0, %v1423_v5  ;;  %v1312_v28 = vld [vmem:[%s1564_s11 + $0x34] ss:$8 sps:$4 sm:$0xff]   ;;  %v1316_v30 = vld [vmem:[%s1564_s11 + $0x30] ss:$8 sps:$4 sm:$0xff]  }
  0x20   : > { %646 = vmatpush1.bf16.msra.mxu0 %v1288_v6  ;;  %1218 = vmatpush1.bf16.msra.mxu1 %v1288_v6  ;;  %v1314_v29 = vld [vmem:[%s1564_s11 + $0xb4] ss:$8 sps:$4 sm:$0xff]   ;;  %v1317_v31 = vld [vmem:[%s1564_s11 + $0xb0] ss:$8 sps:$4 sm:$0xff]   ;;  %v1318_v32 = vld [vmem:[%s1564_s11 + $0x44] ss:$8 sps:$4 sm:$0xff]  }
  0x21   : > { %647 = vmatprep.subr.bf16.mxu0 %v1422_v1  ;;  %1209 = vmatprep.subr.bf16.mxu1 %v1422_v1  ;;  %v1320_v33 = vld [vmem:[%s1564_s11 + $0xc4] ss:$8 sps:$4 sm:$0xff]   ;;  %v1322_v34 = vld [vmem:[%s1564_s11 + $0x40] ss:$8 sps:$4 sm:$0xff]   ;;  %v1324_v36 = vld [vmem:[%s1564_s11 + $0x54] ss:$8 sps:$4 sm:$0xff]  }
  0x22   : > { %v1323_v35 = vld [vmem:[%s1564_s11 + $0xc0] ss:$8 sps:$4 sm:$0xff]   ;;  %v1326_v37 = vld [vmem:[%s1564_s11 + $0xd4] ss:$8 sps:$4 sm:$0xff]   ;;  %v1328_v38 = vld [vmem:[%s1564_s11 + $0x50] ss:$8 sps:$4 sm:$0xff]  }
  0x23   : > { %v1329_v39 = vld [vmem:[%s1564_s11 + $0xd0] ss:$8 sps:$4 sm:$0xff]   ;;  %v1330_v40 = vld [vmem:[%s1564_s11 + $0x64] ss:$8 sps:$4 sm:$0xff]   ;;  %v1334_v42 = vld [vmem:[%s1564_s11 + $0x60] ss:$8 sps:$4 sm:$0xff]  }
  0x24   : > { %648 = vmatpush1.bf16.msra.mxu0 %v1289_v9  ;;  %1219 = vmatpush1.bf16.msra.mxu1 %v1289_v9  ;;  %v1332_v41 = vld [vmem:[%s1564_s11 + $0xe4] ss:$8 sps:$4 sm:$0xff]   ;;  %v1335_v43 = vld [vmem:[%s1564_s11 + $0xe0] ss:$8 sps:$4 sm:$0xff]   ;;  %v1336_v44 = vld [vmem:[%s1564_s11 + $0x74] ss:$8 sps:$4 sm:$0xff]  }
  0x25   : > { %649 = vmatprep.subr.bf16.mxu0 %v1422_v1  ;;  %1210 = vmatprep.subr.bf16.mxu1 %v1422_v1  ;;  %v1338_v45 = vld [vmem:[%s1564_s11 + $0xf4] ss:$8 sps:$4 sm:$0xff]   ;;  %v1340_v46 = vld [vmem:[%s1564_s11 + $0x70] ss:$8 sps:$4 sm:$0xff]   ;;  %v313_v49 = vld [vmem:[#allocation2 + $0x80] sm:$0xff] }
  0x26   : > { %v1341_v47 = vld [vmem:[%s1564_s11 + $0xf0] ss:$8 sps:$4 sm:$0xff]   ;;  %v314_v53 = vld [vmem:[#allocation2 + $0x88] sm:$0xff]  ;;  %s1664_s11 = scalar_lea.vmem [#allocation3], %s1134_s10 }
  0x27   : > { %v300_v5 = vld [vmem:[#allocation2 + $0x18] sm:$0xff]  ;;  %s1016_s19 = sshll.u32 %s1664_s11, 4  ;;  %s1781_s19 = int_to_ptr.vmem [resolvable:$true] %s1016_s19 }
  0x28   : > { %650 = vmatpush1.bf16.msra.mxu0 %v1290_v10  ;;  %1220 = vmatpush1.bf16.msra.mxu1 %v1290_v10  ;;  %v316_v6 = vld [vmem:[#allocation2 + $0x98] sm:$0xff]  ;;  %s1342_s27 = scalar_lea.vmem %s1781_s19, 4096  ;;  %p1349_p1 = scmp.lt.s32.totalorder %s1781_s19, %s1347_s29 }
  0x29   : > { %651 = vmatprep.subr.bf16.mxu0 %v1422_v1  ;;  %1211 = vmatprep.subr.bf16.mxu1 %v1422_v1  ;;  %p1343_p12 = scmp.ne.s32.totalorder %s1781_s19, %s1342_s27  ;;  %p1350_p2 = scmp.lt.s32.totalorder %s1348_s30, %s1342_s27 }
  0x2b   : > { %p1344_p13 = pnand %p1343_p12, %p1488_p4  ;;  %p1351_p3 = por %p1350_p2, %p1349_p1 }
  0x2c   : > { %652 = vmatpush1.bf16.msra.mxu0 %v1291_v11  ;;  %1221 = vmatpush1.bf16.msra.mxu1 %v1291_v11 }
  0x2d   : > { %653 = vmatprep.subr.bf16.mxu0 %v1422_v1  ;;  %1212 = vmatprep.subr.bf16.mxu1 %v1422_v1  ;;  %p1345_p0 = pneg %p1344_p13 }
  0x2f   : > { %p1352_p5 = pnand %p1351_p3, %p1345_p0 }
  0x30   : > { %654 = vmatpush1.bf16.msra.mxu0 %v1292_v14  ;;  %1222 = vmatpush1.bf16.msra.mxu1 %v1292_v14 }
  0x31   : > { %655 = vmatprep.subr.bf16.mxu0 %v1422_v1  ;;  %1213 = vmatprep.subr.bf16.mxu1 %v1422_v1  ;;  %v315_v1 = vld [vmem:[#allocation2 + $0x90] sm:$0xff] }
  0x34   : > { %656 = vmatpush1.bf16.msra.mxu0 %v635_v17  ;;  %1223 = vmatpush1.bf16.msra.mxu1 %v635_v17 }
  0x37   : > { %670 = vmatmul.mubr.bf16.vlgmr.msra.gmra.mrb[0].mxu0 %v1294_v18  ;;  %734 = vmatmul.mubr.bf16.vlgmr.msra.gmra.mrb[0].mxu1 %v1297_v19 }
  0x38   : > { %1181 = vmatprep.mubr.msk.bf16.mxu0 %vm581_vm1, %v1300_v20  ;;  %1189 = vmatprep.mubr.msk.bf16.mxu1 %vm581_vm1, %v1302_v21 }
  0x3f   : > { %678 = vmatmul.mubr.bf16.gmra.mrb[4].mxu0 %v1304_v22  ;;  %742 = vmatmul.mubr.bf16.gmra.mrb[4].mxu1 %v1305_v23 }
  0x40   : > { %1182 = vmatprep.mubr.msk.bf16.mxu0 %vm581_vm1, %v1306_v24  ;;  %1190 = vmatprep.mubr.msk.bf16.mxu1 %vm581_vm1, %v1308_v25 }
  0x47   : > { %686 = vmatmul.mubr.bf16.gmra.mrb[8].mxu0 %v1310_v26  ;;  %750 = vmatmul.mubr.bf16.gmra.mrb[8].mxu1 %v1311_v27  ;;  %v301_v27 = vld [vmem:[#allocation2 + $0x20] sm:$0xff] }
  0x48   : > { %1183 = vmatprep.mubr.msk.bf16.mxu0 %vm581_vm1, %v1312_v28  ;;  %1191 = vmatprep.mubr.msk.bf16.mxu1 %vm581_vm1, %v1314_v29  ;;  %v317_v28 = vld [vmem:[#allocation2 + $0xa0] sm:$0xff] }
  0x4f   : > { %694 = vmatmul.mubr.bf16.gmra.mrb[12].mxu0 %v1316_v30  ;;  %758 = vmatmul.mubr.bf16.gmra.mrb[12].mxu1 %v1317_v31 }
  0x50   : > { %1184 = vmatprep.mubr.msk.bf16.mxu0 %vm581_vm1, %v1318_v32  ;;  %1192 = vmatprep.mubr.msk.bf16.mxu1 %vm581_vm1, %v1320_v33  ;;  %v302_v33 = vld [vmem:[#allocation2 + $0x28] sm:$0xff] }
  0x57   : > { %702 = vmatmul.mubr.bf16.gmra.mrb[16].mxu0 %v1322_v34  ;;  %766 = vmatmul.mubr.bf16.gmra.mrb[16].mxu1 %v1323_v35  ;;  %v318_v34 = vld [vmem:[#allocation2 + $0xa8] sm:$0xff] }
  0x58   : > { %1185 = vmatprep.mubr.msk.bf16.mxu0 %vm581_vm1, %v1324_v36  ;;  %1193 = vmatprep.mubr.msk.bf16.mxu1 %vm581_vm1, %v1326_v37 }
  0x5f   : > { %710 = vmatmul.mubr.bf16.gmra.mrb[20].mxu0 %v1328_v38  ;;  %774 = vmatmul.mubr.bf16.gmra.mrb[20].mxu1 %v1329_v39 }
  0x60   : > { %1186 = vmatprep.mubr.msk.bf16.mxu0 %vm581_vm1, %v1330_v40  ;;  %1194 = vmatprep.mubr.msk.bf16.mxu1 %vm581_vm1, %v1332_v41 }
  0x67   : > { %718 = vmatmul.mubr.bf16.gmra.mrb[24].mxu0 %v1334_v42  ;;  %782 = vmatmul.mubr.bf16.gmra.mrb[24].mxu1 %v1335_v43 }
  0x68   : > { %1187 = vmatprep.mubr.msk.bf16.mxu0 %vm581_vm1, %v1336_v44  ;;  %1195 = vmatprep.mubr.msk.bf16.mxu1 %vm581_vm1, %v1338_v45 }
  0x6f   : > { %726 = vmatmul.mubr.bf16.gmra.mrb[28].mxu0 %v1340_v46  ;;  %790 = vmatmul.mubr.bf16.gmra.mrb[28].mxu1 %v1341_v47 }
 0x10a   : > { %v671_v50 = vpop.f32.mrb[0].mxu0  ;;  %v735_v51 = vpop.f32.mrb[0].mxu1 }
 0x10b   : > { %v798_v54 = vadd.f32 %v671_v50, %v297_v48  ;;  %v814_v55 = vadd.f32 %v735_v51, %v313_v49  ;;  %v673_v56 = vpop.f32.mrb[1].mxu0  ;;  %v737_v57 = vpop.f32.mrb[1].mxu1 }
 0x10c   : > { %v674_v58 = vpop.f32.mrb[2].mxu0  ;;  %v738_v59 = vpop.f32.mrb[2].mxu1  ;;  %v319_v56 = vld [vmem:[#allocation2 + $0xb0] sm:$0xff] }
 0x10d   : > { %831 = vst.msk [vmem:[#allocation2] sm:$0xff] %vm264_vm0, %v798_v54  ;;  %847 = vst.msk [vmem:[#allocation2 + $0x80] sm:$0xff] %vm264_vm0, %v814_v55  ;;  %v799_v60 = vadd.f32 %v674_v58, %v298_v52  ;;  %v815_v61 = vadd.f32 %v738_v59, %v314_v53  ;;  %v676_v62 = vpop.f32.mrb[3].mxu0  ;;  %v740_v63 = vpop.f32.mrb[3].mxu1  ;;  %v303_v55 = vld [vmem:[#allocation2 + $0x30] sm:$0xff] }
 0x10e   : > { %v320_v62 = vld [vmem:[#allocation2 + $0xb8] sm:$0xff] }
 0x10f   : > { %832 = vst.msk [vmem:[#allocation2 + $0x8] sm:$0xff] %vm264_vm0, %v799_v60  ;;  %848 = vst.msk [vmem:[#allocation2 + $0x88] sm:$0xff] %vm264_vm0, %v815_v61  ;;  %v304_v61 = vld [vmem:[#allocation2 + $0x38] sm:$0xff] }
 0x112   : > { %v679_v3 = vpop.f32.mrb[4].mxu0  ;;  %v743_v4 = vpop.f32.mrb[4].mxu1 }
 0x113   : > { %v800_v7 = vadd.f32 %v679_v3, %v299_v0  ;;  %v816_v8 = vadd.f32 %v743_v4, %v315_v1  ;;  %v681_v9 = vpop.f32.mrb[5].mxu0  ;;  %v745_v10 = vpop.f32.mrb[5].mxu1 }
 0x114   : > { %v866_v11 = vld [vmem:[#allocation2] sm:$0xff]  ;;  %v682_v13 = vpop.f32.mrb[6].mxu0  ;;  %v746_v14 = vpop.f32.mrb[6].mxu1 }
 0x115   : > { %v882_v12 = vld [vmem:[#allocation2 + $0x80] sm:$0xff]  ;;  %v905_v15 = vadd.f32 %v1652_v2, %v866_v11  ;;  %833 = vst.msk [vmem:[#allocation2 + $0x10] sm:$0xff] %vm264_vm0, %v800_v7  ;;  %849 = vst.msk [vmem:[#allocation2 + $0x90] sm:$0xff] %vm264_vm0, %v816_v8  ;;  %v801_v17 = vadd.f32 %v682_v13, %v300_v5  ;;  %v817_v18 = vadd.f32 %v746_v14, %v316_v6  ;;  %v684_v19 = vpop.f32.mrb[7].mxu0  ;;  %v748_v20 = vpop.f32.mrb[7].mxu1 }
 0x116   : > { %v921_v16 = vadd.f32 %v1652_v2, %v882_v12  ;;  %v867_v21 = vld [vmem:[#allocation2 + $0x8] sm:$0xff]  ;;  %v305_v20 = vld [vmem:[#allocation2 + $0x40] sm:$0xff] }
 0x117   : > { %v883_v22 = vld [vmem:[#allocation2 + $0x88] sm:$0xff]  ;;  %v937_v23 = vmax.f32 %v905_v15, 0.0  ;;  %v906_v25 = vadd.f32 %v1652_v2, %v867_v21  ;;  %834 = vst.msk [vmem:[#allocation2 + $0x18] sm:$0xff] %vm264_vm0, %v801_v17  ;;  %850 = vst.msk [vmem:[#allocation2 + $0x98] sm:$0xff] %vm264_vm0, %v817_v18  ;;  %v321_v21 = vld [vmem:[#allocation2 + $0xc0] sm:$0xff] }
 0x118   : > { %v953_v24 = vmax.f32 %v921_v16, 0.0  ;;  %v922_v26 = vadd.f32 %v1652_v2, %v883_v22 }
 0x119   : > { %969 = vst.msk [vmem:[%s1664_s11] sm:$0xff] %vm264_vm0, %v937_v23  ;;  %v938_v29 = vmax.f32 %v906_v25, 0.0 }
 0x11a   : > { %985 = vst.msk [vmem:[%s1664_s11 + $0x80] sm:$0xff] %vm264_vm0, %v953_v24  ;;  %v954_v30 = vmax.f32 %v922_v26, 0.0  ;;  %v687_v31 = vpop.f32.mrb[8].mxu0  ;;  %v751_v32 = vpop.f32.mrb[8].mxu1  ;;  %v306_v26 = vld [vmem:[#allocation2 + $0x48] sm:$0xff] }
 0x11b   : > { %970 = vst.msk [vmem:[%s1664_s11 + $0x8] sm:$0xff] %vm264_vm0, %v938_v29  ;;  %v802_v35 = vadd.f32 %v687_v31, %v301_v27  ;;  %v818_v36 = vadd.f32 %v751_v32, %v317_v28  ;;  %v689_v37 = vpop.f32.mrb[9].mxu0  ;;  %v753_v38 = vpop.f32.mrb[9].mxu1  ;;  %v322_v27 = vld [vmem:[#allocation2 + $0xc8] sm:$0xff] }
 0x11c   : > { %986 = vst.msk [vmem:[%s1664_s11 + $0x88] sm:$0xff] %vm264_vm0, %v954_v30  ;;  %v868_v39 = vld [vmem:[#allocation2 + $0x10] sm:$0xff]  ;;  %v690_v41 = vpop.f32.mrb[10].mxu0  ;;  %v754_v42 = vpop.f32.mrb[10].mxu1 }
 0x11d   : > { %v884_v40 = vld [vmem:[#allocation2 + $0x90] sm:$0xff]  ;;  %v907_v43 = vadd.f32 %v1652_v2, %v868_v39  ;;  %835 = vst.msk [vmem:[#allocation2 + $0x20] sm:$0xff] %vm264_vm0, %v802_v35  ;;  %851 = vst.msk [vmem:[#allocation2 + $0xa0] sm:$0xff] %vm264_vm0, %v818_v36  ;;  %v803_v45 = vadd.f32 %v690_v41, %v302_v33  ;;  %v819_v46 = vadd.f32 %v754_v42, %v318_v34  ;;  %v692_v47 = vpop.f32.mrb[11].mxu0  ;;  %v756_v48 = vpop.f32.mrb[11].mxu1 }
 0x11e   : > { %v923_v44 = vadd.f32 %v1652_v2, %v884_v40  ;;  %v869_v49 = vld [vmem:[#allocation2 + $0x18] sm:$0xff]  ;;  %v307_v48 = vld [vmem:[#allocation2 + $0x50] sm:$0xff] }
 0x11f   : > { %v885_v50 = vld [vmem:[#allocation2 + $0x98] sm:$0xff]  ;;  %v939_v51 = vmax.f32 %v907_v43, 0.0  ;;  %v908_v53 = vadd.f32 %v1652_v2, %v869_v49  ;;  %836 = vst.msk [vmem:[#allocation2 + $0x28] sm:$0xff] %vm264_vm0, %v803_v45  ;;  %852 = vst.msk [vmem:[#allocation2 + $0xa8] sm:$0xff] %vm264_vm0, %v819_v46  ;;  %v323_v49 = vld [vmem:[#allocation2 + $0xd0] sm:$0xff] }
 0x120   : > { %v955_v52 = vmax.f32 %v923_v44, 0.0  ;;  %v924_v54 = vadd.f32 %v1652_v2, %v885_v50 }
 0x121   : > { %971 = vst.msk [vmem:[%s1664_s11 + $0x10] sm:$0xff] %vm264_vm0, %v939_v51  ;;  %v940_v57 = vmax.f32 %v908_v53, 0.0 }
 0x122   : > { %987 = vst.msk [vmem:[%s1664_s11 + $0x90] sm:$0xff] %vm264_vm0, %v955_v52  ;;  %v956_v58 = vmax.f32 %v924_v54, 0.0  ;;  %v695_v59 = vpop.f32.mrb[12].mxu0  ;;  %v759_v60 = vpop.f32.mrb[12].mxu1  ;;  %v308_v54 = vld [vmem:[#allocation2 + $0x58] sm:$0xff] }
 0x123   : > { %972 = vst.msk [vmem:[%s1664_s11 + $0x18] sm:$0xff] %vm264_vm0, %v940_v57  ;;  %v804_v63 = vadd.f32 %v695_v59, %v303_v55  ;;  %v820_v0 = vadd.f32 %v759_v60, %v319_v56  ;;  %v697_v1 = vpop.f32.mrb[13].mxu0  ;;  %v761_v3 = vpop.f32.mrb[13].mxu1  ;;  %v324_v55 = vld [vmem:[#allocation2 + $0xd8] sm:$0xff] }
 0x124   : > { %988 = vst.msk [vmem:[%s1664_s11 + $0x98] sm:$0xff] %vm264_vm0, %v956_v58  ;;  %v870_v4 = vld [vmem:[#allocation2 + $0x20] sm:$0xff]  ;;  %v698_v6 = vpop.f32.mrb[14].mxu0  ;;  %v762_v7 = vpop.f32.mrb[14].mxu1 }
 0x125   : > { %v886_v5 = vld [vmem:[#allocation2 + $0xa0] sm:$0xff]  ;;  %v909_v8 = vadd.f32 %v1652_v2, %v870_v4  ;;  %837 = vst.msk [vmem:[#allocation2 + $0x30] sm:$0xff] %vm264_vm0, %v804_v63  ;;  %853 = vst.msk [vmem:[#allocation2 + $0xb0] sm:$0xff] %vm264_vm0, %v820_v0  ;;  %v805_v10 = vadd.f32 %v698_v6, %v304_v61  ;;  %v821_v11 = vadd.f32 %v762_v7, %v320_v62  ;;  %v700_v12 = vpop.f32.mrb[15].mxu0  ;;  %v764_v13 = vpop.f32.mrb[15].mxu1 }
 0x126   : > { %v925_v9 = vadd.f32 %v1652_v2, %v886_v5  ;;  %v871_v14 = vld [vmem:[#allocation2 + $0x28] sm:$0xff]  ;;  %v309_v13 = vld [vmem:[#allocation2 + $0x60] sm:$0xff] }
 0x127   : > { %v887_v15 = vld [vmem:[#allocation2 + $0xa8] sm:$0xff]  ;;  %v941_v16 = vmax.f32 %v909_v8, 0.0  ;;  %v910_v18 = vadd.f32 %v1652_v2, %v871_v14  ;;  %838 = vst.msk [vmem:[#allocation2 + $0x38] sm:$0xff] %vm264_vm0, %v805_v10  ;;  %854 = vst.msk [vmem:[#allocation2 + $0xb8] sm:$0xff] %vm264_vm0, %v821_v11  ;;  %v325_v14 = vld [vmem:[#allocation2 + $0xe0] sm:$0xff] }
 0x128   : > { %v957_v17 = vmax.f32 %v925_v9, 0.0  ;;  %v926_v19 = vadd.f32 %v1652_v2, %v887_v15 }
 0x129   : > { %973 = vst.msk [vmem:[%s1664_s11 + $0x20] sm:$0xff] %vm264_vm0, %v941_v16  ;;  %v942_v22 = vmax.f32 %v910_v18, 0.0 }
 0x12a   : > { %989 = vst.msk [vmem:[%s1664_s11 + $0xa0] sm:$0xff] %vm264_vm0, %v957_v17  ;;  %v958_v23 = vmax.f32 %v926_v19, 0.0  ;;  %v703_v24 = vpop.f32.mrb[16].mxu0  ;;  %v767_v25 = vpop.f32.mrb[16].mxu1  ;;  %v310_v19 = vld [vmem:[#allocation2 + $0x68] sm:$0xff] }
 0x12b   : > { %974 = vst.msk [vmem:[%s1664_s11 + $0x28] sm:$0xff] %vm264_vm0, %v942_v22  ;;  %v806_v28 = vadd.f32 %v703_v24, %v305_v20  ;;  %v822_v29 = vadd.f32 %v767_v25, %v321_v21  ;;  %v705_v30 = vpop.f32.mrb[17].mxu0  ;;  %v769_v31 = vpop.f32.mrb[17].mxu1  ;;  %v326_v20 = vld [vmem:[#allocation2 + $0xe8] sm:$0xff] }
 0x12c   : > { %990 = vst.msk [vmem:[%s1664_s11 + $0xa8] sm:$0xff] %vm264_vm0, %v958_v23  ;;  %v872_v32 = vld [vmem:[#allocation2 + $0x30] sm:$0xff]  ;;  %v706_v34 = vpop.f32.mrb[18].mxu0  ;;  %v770_v35 = vpop.f32.mrb[18].mxu1 }
 0x12d   : > { %v888_v33 = vld [vmem:[#allocation2 + $0xb0] sm:$0xff]  ;;  %v911_v36 = vadd.f32 %v1652_v2, %v872_v32  ;;  %839 = vst.msk [vmem:[#allocation2 + $0x40] sm:$0xff] %vm264_vm0, %v806_v28  ;;  %855 = vst.msk [vmem:[#allocation2 + $0xc0] sm:$0xff] %vm264_vm0, %v822_v29  ;;  %v807_v38 = vadd.f32 %v706_v34, %v306_v26  ;;  %v823_v39 = vadd.f32 %v770_v35, %v322_v27  ;;  %v708_v40 = vpop.f32.mrb[19].mxu0  ;;  %v772_v41 = vpop.f32.mrb[19].mxu1 }
 0x12e   : > { %v927_v37 = vadd.f32 %v1652_v2, %v888_v33  ;;  %v873_v42 = vld [vmem:[#allocation2 + $0x38] sm:$0xff]  ;;  %v311_v41 = vld [vmem:[#allocation2 + $0x70] sm:$0xff] }
 0x12f   : > { %v889_v43 = vld [vmem:[#allocation2 + $0xb8] sm:$0xff]  ;;  %v943_v44 = vmax.f32 %v911_v36, 0.0  ;;  %v912_v46 = vadd.f32 %v1652_v2, %v873_v42  ;;  %840 = vst.msk [vmem:[#allocation2 + $0x48] sm:$0xff] %vm264_vm0, %v807_v38  ;;  %856 = vst.msk [vmem:[#allocation2 + $0xc8] sm:$0xff] %vm264_vm0, %v823_v39  ;;  %v327_v42 = vld [vmem:[#allocation2 + $0xf0] sm:$0xff] }
 0x130   : > { %v959_v45 = vmax.f32 %v927_v37, 0.0  ;;  %v928_v47 = vadd.f32 %v1652_v2, %v889_v43 }
 0x131   : > { %975 = vst.msk [vmem:[%s1664_s11 + $0x30] sm:$0xff] %vm264_vm0, %v943_v44  ;;  %v944_v50 = vmax.f32 %v912_v46, 0.0 }
 0x132   : > { %991 = vst.msk [vmem:[%s1664_s11 + $0xb0] sm:$0xff] %vm264_vm0, %v959_v45  ;;  %v960_v51 = vmax.f32 %v928_v47, 0.0  ;;  %v711_v52 = vpop.f32.mrb[20].mxu0  ;;  %v775_v53 = vpop.f32.mrb[20].mxu1  ;;  %v312_v47 = vld [vmem:[#allocation2 + $0x78] sm:$0xff] }
 0x133   : > { %976 = vst.msk [vmem:[%s1664_s11 + $0x38] sm:$0xff] %vm264_vm0, %v944_v50  ;;  %v808_v56 = vadd.f32 %v711_v52, %v307_v48  ;;  %v824_v57 = vadd.f32 %v775_v53, %v323_v49  ;;  %v713_v58 = vpop.f32.mrb[21].mxu0  ;;  %v777_v59 = vpop.f32.mrb[21].mxu1  ;;  %v328_v48 = vld [vmem:[#allocation2 + $0xf8] sm:$0xff] }
 0x134   : > { %992 = vst.msk [vmem:[%s1664_s11 + $0xb8] sm:$0xff] %vm264_vm0, %v960_v51  ;;  %v874_v60 = vld [vmem:[#allocation2 + $0x40] sm:$0xff]  ;;  %v714_v62 = vpop.f32.mrb[22].mxu0  ;;  %v778_v63 = vpop.f32.mrb[22].mxu1 }
 0x135   : > { %v890_v61 = vld [vmem:[#allocation2 + $0xc0] sm:$0xff]  ;;  %v913_v0 = vadd.f32 %v1652_v2, %v874_v60  ;;  %841 = vst.msk [vmem:[#allocation2 + $0x50] sm:$0xff] %vm264_vm0, %v808_v56  ;;  %857 = vst.msk [vmem:[#allocation2 + $0xd0] sm:$0xff] %vm264_vm0, %v824_v57  ;;  %v809_v3 = vadd.f32 %v714_v62, %v308_v54  ;;  %v825_v4 = vadd.f32 %v778_v63, %v324_v55  ;;  %v716_v5 = vpop.f32.mrb[23].mxu0  ;;  %v780_v6 = vpop.f32.mrb[23].mxu1 }
 0x136   : > { %v929_v1 = vadd.f32 %v1652_v2, %v890_v61  ;;  %v875_v7 = vld [vmem:[#allocation2 + $0x48] sm:$0xff] }
 0x137   : > { %v891_v8 = vld [vmem:[#allocation2 + $0xc8] sm:$0xff]  ;;  %v945_v9 = vmax.f32 %v913_v0, 0.0  ;;  %v914_v11 = vadd.f32 %v1652_v2, %v875_v7  ;;  %842 = vst.msk [vmem:[#allocation2 + $0x58] sm:$0xff] %vm264_vm0, %v809_v3  ;;  %858 = vst.msk [vmem:[#allocation2 + $0xd8] sm:$0xff] %vm264_vm0, %v825_v4 }
 0x138   : > { %v961_v10 = vmax.f32 %v929_v1, 0.0  ;;  %v930_v12 = vadd.f32 %v1652_v2, %v891_v8 }
 0x139   : > { %977 = vst.msk [vmem:[%s1664_s11 + $0x40] sm:$0xff] %vm264_vm0, %v945_v9  ;;  %v946_v15 = vmax.f32 %v914_v11, 0.0 }
 0x13a   : > { %993 = vst.msk [vmem:[%s1664_s11 + $0xc0] sm:$0xff] %vm264_vm0, %v961_v10  ;;  %v962_v16 = vmax.f32 %v930_v12, 0.0  ;;  %v719_v17 = vpop.f32.mrb[24].mxu0  ;;  %v783_v18 = vpop.f32.mrb[24].mxu1 }
 0x13b   : > { %978 = vst.msk [vmem:[%s1664_s11 + $0x48] sm:$0xff] %vm264_vm0, %v946_v15  ;;  %v810_v21 = vadd.f32 %v719_v17, %v309_v13  ;;  %v826_v22 = vadd.f32 %v783_v18, %v325_v14  ;;  %v721_v23 = vpop.f32.mrb[25].mxu0  ;;  %v785_v24 = vpop.f32.mrb[25].mxu1 }
 0x13c   : > { %994 = vst.msk [vmem:[%s1664_s11 + $0xc8] sm:$0xff] %vm264_vm0, %v962_v16  ;;  %v876_v25 = vld [vmem:[#allocation2 + $0x50] sm:$0xff]  ;;  %v722_v27 = vpop.f32.mrb[26].mxu0  ;;  %v786_v28 = vpop.f32.mrb[26].mxu1 }
 0x13d   : > { %v892_v26 = vld [vmem:[#allocation2 + $0xd0] sm:$0xff]  ;;  %v915_v29 = vadd.f32 %v1652_v2, %v876_v25  ;;  %843 = vst.msk [vmem:[#allocation2 + $0x60] sm:$0xff] %vm264_vm0, %v810_v21  ;;  %859 = vst.msk [vmem:[#allocation2 + $0xe0] sm:$0xff] %vm264_vm0, %v826_v22  ;;  %v811_v31 = vadd.f32 %v722_v27, %v310_v19  ;;  %v827_v32 = vadd.f32 %v786_v28, %v326_v20  ;;  %v724_v33 = vpop.f32.mrb[27].mxu0  ;;  %v788_v34 = vpop.f32.mrb[27].mxu1 }
 0x13e   : > { %v931_v30 = vadd.f32 %v1652_v2, %v892_v26  ;;  %v877_v35 = vld [vmem:[#allocation2 + $0x58] sm:$0xff] }
 0x13f   : > { %v893_v36 = vld [vmem:[#allocation2 + $0xd8] sm:$0xff]  ;;  %v947_v37 = vmax.f32 %v915_v29, 0.0  ;;  %v916_v39 = vadd.f32 %v1652_v2, %v877_v35  ;;  %844 = vst.msk [vmem:[#allocation2 + $0x68] sm:$0xff] %vm264_vm0, %v811_v31  ;;  %860 = vst.msk [vmem:[#allocation2 + $0xe8] sm:$0xff] %vm264_vm0, %v827_v32 }
 0x140   : > { %v963_v38 = vmax.f32 %v931_v30, 0.0  ;;  %v932_v40 = vadd.f32 %v1652_v2, %v893_v36 }
 0x141   : > { %979 = vst.msk [vmem:[%s1664_s11 + $0x50] sm:$0xff] %vm264_vm0, %v947_v37  ;;  %v948_v43 = vmax.f32 %v916_v39, 0.0 }
 0x142   : > { %995 = vst.msk [vmem:[%s1664_s11 + $0xd0] sm:$0xff] %vm264_vm0, %v963_v38  ;;  %v964_v44 = vmax.f32 %v932_v40, 0.0  ;;  %v727_v45 = vpop.f32.mrb[28].mxu0  ;;  %v791_v46 = vpop.f32.mrb[28].mxu1 }
 0x143   : > { %980 = vst.msk [vmem:[%s1664_s11 + $0x58] sm:$0xff] %vm264_vm0, %v948_v43  ;;  %v812_v49 = vadd.f32 %v727_v45, %v311_v41  ;;  %v828_v50 = vadd.f32 %v791_v46, %v327_v42  ;;  %v729_v51 = vpop.f32.mrb[29].mxu0  ;;  %v793_v52 = vpop.f32.mrb[29].mxu1 }
 0x144   : > { %996 = vst.msk [vmem:[%s1664_s11 + $0xd8] sm:$0xff] %vm264_vm0, %v964_v44  ;;  %v878_v53 = vld [vmem:[#allocation2 + $0x60] sm:$0xff]  ;;  %v730_v55 = vpop.f32.mrb[30].mxu0  ;;  %v794_v56 = vpop.f32.mrb[30].mxu1 }
 0x145   : > { %v894_v54 = vld [vmem:[#allocation2 + $0xe0] sm:$0xff]  ;;  %v917_v57 = vadd.f32 %v1652_v2, %v878_v53  ;;  %845 = vst.msk [vmem:[#allocation2 + $0x70] sm:$0xff] %vm264_vm0, %v812_v49  ;;  %861 = vst.msk [vmem:[#allocation2 + $0xf0] sm:$0xff] %vm264_vm0, %v828_v50  ;;  %v813_v59 = vadd.f32 %v730_v55, %v312_v47  ;;  %v829_v60 = vadd.f32 %v794_v56, %v328_v48  ;;  %v732_v61 = vpop.f32.mrb[31].mxu0  ;;  %v796_v62 = vpop.f32.mrb[31].mxu1 }
 0x146   : > { %v933_v58 = vadd.f32 %v1652_v2, %v894_v54  ;;  %v879_v63 = vld [vmem:[#allocation2 + $0x68] sm:$0xff] }
 0x147   : > { %v895_v0 = vld [vmem:[#allocation2 + $0xe8] sm:$0xff]  ;;  %v949_v1 = vmax.f32 %v917_v57, 0.0  ;;  %v918_v4 = vadd.f32 %v1652_v2, %v879_v63  ;;  %846 = vst.msk [vmem:[#allocation2 + $0x78] sm:$0xff] %vm264_vm0, %v813_v59  ;;  %862 = vst.msk [vmem:[#allocation2 + $0xf8] sm:$0xff] %vm264_vm0, %v829_v60 }
 0x148   : > { %v965_v3 = vmax.f32 %v933_v58, 0.0  ;;  %v934_v5 = vadd.f32 %v1652_v2, %v895_v0 }
 0x149   : > { %981 = vst.msk [vmem:[%s1664_s11 + $0x60] sm:$0xff] %vm264_vm0, %v949_v1  ;;  %v950_v6 = vmax.f32 %v918_v4, 0.0 }
 0x14a   : > { %997 = vst.msk [vmem:[%s1664_s11 + $0xe0] sm:$0xff] %vm264_vm0, %v965_v3  ;;  %v966_v7 = vmax.f32 %v934_v5, 0.0 }
 0x14b   : > { %982 = vst.msk [vmem:[%s1664_s11 + $0x68] sm:$0xff] %vm264_vm0, %v950_v6 }
 0x14c   : > { %998 = vst.msk [vmem:[%s1664_s11 + $0xe8] sm:$0xff] %vm264_vm0, %v966_v7  ;;  %v880_v8 = vld [vmem:[#allocation2 + $0x70] sm:$0xff] }
 0x14d   : > { %v896_v9 = vld [vmem:[#allocation2 + $0xf0] sm:$0xff]  ;;  %v919_v10 = vadd.f32 %v1652_v2, %v880_v8 }
 0x14e   : > { %v935_v11 = vadd.f32 %v1652_v2, %v896_v9  ;;  %v881_v12 = vld [vmem:[#allocation2 + $0x78] sm:$0xff] }
 0x14f   : > { %v897_v13 = vld [vmem:[#allocation2 + $0xf8] sm:$0xff]  ;;  %v951_v14 = vmax.f32 %v919_v10, 0.0  ;;  %v920_v16 = vadd.f32 %v1652_v2, %v881_v12 }
 0x150   : > { %v967_v15 = vmax.f32 %v935_v11, 0.0  ;;  %v936_v17 = vadd.f32 %v1652_v2, %v897_v13 }
 0x151   : > { %983 = vst.msk [vmem:[%s1664_s11 + $0x70] sm:$0xff] %vm264_vm0, %v951_v14  ;;  %v952_v18 = vmax.f32 %v920_v16, 0.0 }
 0x152   : > { %999 = vst.msk [vmem:[%s1664_s11 + $0xf0] sm:$0xff] %vm264_vm0, %v967_v15  ;;  %v968_v19 = vmax.f32 %v936_v17, 0.0 }
 0x153   : > { %984 = vst.msk [vmem:[%s1664_s11 + $0x78] sm:$0xff] %vm264_vm0, %v952_v18 }
 0x154   : > { %1000 = vst.msk [vmem:[%s1664_s11 + $0xf8] sm:$0xff] %vm264_vm0, %v968_v19 }
 0x155   : > { %1355 = shalt.err (!%p1352_p5)
}
 0x156   : > { %s1356_s4 = scalar_lea.hbm %s1779_s26, 4096  ;;  %s1360_s7 = scalar_lea.hbm %s1842_s3, 32768 }
 0x157   : > { %p1357_p6 = scmp.ne.s32.totalorder %s1779_s26, %s1356_s4  ;;  %p1361_p10 = scmp.lt.u32.totalorder %s1779_s26, %s1842_s3 }
 0x158   : > { %p1362_p11 = scmp.lt.u32.totalorder %s1360_s7, %s1356_s4  ;;  %p1364_p13 = scmp.lt.u32.totalorder %s1356_s4, %s1779_s26 }
 0x159   : > { %p1358_p7 = pnand %p1357_p6, %p1488_p4 }
 0x15a   : > { %p1363_p12 = por %p1362_p11, %p1361_p10 }
 0x15b   : > { %p1359_p9 = pneg %p1358_p7 }
 0x15c   : > { %p1365_p0 = por %p1364_p13, %p1363_p12 }
 0x15e   : > { %p1366_p1 = pnand %p1365_p0, %p1359_p9 }
 0x160   : > { %1369 = shalt.err (!%p1366_p1)
}
 0x161   : > { %s1426_s10 = smov 128   ;;  %s1427_s11 = smov 8  }
 0x162   : > { %1224 = dma.vmem_to_hbm [thread:$0]  (%p1488_p4), %s1781_s19, 4096, %s1779_s26, %s1793_s15, %s1426_s10, %s1426_s10, %s1427_s11  }
 0x163 PF: > { %p1230_p2 = scmp.ge.s32.totalorder %s1420_s17, 2  ;;  %s1031_s18 = sand.u32 1, %s1400_s12  }
 0x164   : > { %s1032_s21 = scalar_lea.sflag [#allocation4], %s1031_s18 }
 0x165   : > { %p1227_p3 = pnand %p1230_p2, %p1495_p8 }
 0x167   : > { %1395 = dma.done.wait (!%p1227_p3), %s1032_s21, 4096  }
 0x168   : > { %1397 = vsyncadd (!%p1227_p3), %s1032_s21, 4294963200  ;;  %s16_s17 = sadd.s32 1, %s1420_s17   ;;  %s1845_s12 = smov %s1404_s13 }
 0x169   : > { %p13_p5 = scmp.ge.s32.totalorder %s16_s17, 10   ;;  %s1846_s13 = smov %s1408_s14 }
 0x16a   : > { %s1847_s14 = smov %s1501_s25  ;;  %s1848_s15 = smov %s1416_s16 }
 0x16b   : > { %s1849_s16 = smov %s1851_s20  ;;  %15 = sbr.rel (!%p13_p5) target bundleno = 4 (0x4), region = 81 }
 0x172   :  { %1037 = vsyncpa [#allocation4], 1 }
 0x173   :  { %1039 = vsyncpa [#allocation4 + $0x1], 1 }

</bundles_post_ra>
